<compile_context>
chip_gen: v7x
topology: tpu7x:2x2x1
jax: 0.10.0
libtpu: 0.0.40
codegen_flags: <defaults>
</compile_context>

<pallas_src>
import functools
import math

import jax
import jax.numpy as jnp
from jax.experimental import pallas as pl
from jax.experimental.pallas import tpu as pltpu

_LANES = 128
_SUBLANES = 8


def _round_up(x, m):
    return ((x + m - 1) // m) * m


def _vmem_capacity_bytes():
    """Per-core VMEM capacity; conservative fallback if the query is unavailable."""
    try:
        info = pltpu.get_tpu_info()
        cap = int(getattr(info, "vmem_capacity_bytes", 0))
        if cap > 0:
            return cap
    except Exception:
        pass
    return 64 << 20  # smallest current generation (v7x per-TensorCore)


def _padded_vmem_elems(shape):
    """Element count of `shape` once padded to the (8, 128) VMEM tile grid."""
    if len(shape) == 0:
        shape = (1, 1)
    elif len(shape) == 1:
        shape = (1, shape[0])
    lead = 1
    for d in shape[:-2]:
        lead *= int(d)
    return (lead
            * _round_up(max(int(shape[-2]), 1), _SUBLANES)
            * _round_up(max(int(shape[-1]), 1), _LANES))


# ---------------------------------------------------------------------------
# Fused single-call path (whole arrays resident in VMEM, no grid)
# ---------------------------------------------------------------------------
def _fused_kernel(p_ref, t_ref, err_ref, serr_ref, *, delta_pct, eps):
    p = p_ref[...].astype(jnp.float32)
    t = t_ref[...].astype(jnp.float32)
    diff = jnp.abs(p - t)
    delta = delta_pct * jnp.max(diff)
    inv_den = 1.0 / (2.0 * delta + eps)
    berhu = jnp.where(diff <= delta, diff, (diff * diff + delta * delta) * inv_den)
    err_ref[...] = berhu.astype(err_ref.dtype)
    serr_ref[...] = jnp.full((1, _LANES), jnp.sum(berhu), jnp.float32)


def _fused_kernel_masked(p_ref, t_ref, m_ref, err_ref, serr_ref, smask_ref, *,
                         delta_pct, eps):
    p = p_ref[...].astype(jnp.float32)
    t = t_ref[...].astype(jnp.float32)
    m = m_ref[...].astype(jnp.float32)
    diff = jnp.abs(p - t)
    delta = delta_pct * jnp.max(diff)
    inv_den = 1.0 / (2.0 * delta + eps)
    berhu = jnp.where(diff <= delta, diff, (diff * diff + delta * delta) * inv_den)
    err = m * berhu
    err_ref[...] = err.astype(err_ref.dtype)
    serr_ref[...] = jnp.full((1, _LANES), jnp.sum(err), jnp.float32)
    smask_ref[...] = jnp.full((1, _LANES), jnp.sum(m), jnp.float32)


# ---------------------------------------------------------------------------
# Tiled streaming path, pass 1: per-block (8, 128) max of |pred - target|
# ---------------------------------------------------------------------------
def _absmax_kernel(p_ref, t_ref, pmax_ref):
    diff = jnp.abs(p_ref[...].astype(jnp.float32) - t_ref[...].astype(jnp.float32))
    r = diff.shape[0] // _SUBLANES
    pmax_ref[0] = jnp.max(diff.reshape(r, _SUBLANES, _LANES), axis=0)


# ---------------------------------------------------------------------------
# Tiled streaming path, pass 2: berHu elementwise + per-block (8, 128) sums
# ---------------------------------------------------------------------------
def _berhu_kernel(scal_ref, p_ref, t_ref, err_ref, perr_ref):
    # scal_ref (SMEM): [delta, delta^2, 1/(2*delta + eps)]
    delta, delta_sq, inv_den = scal_ref[0], scal_ref[1], scal_ref[2]
    diff = jnp.abs(p_ref[...].astype(jnp.float32) - t_ref[...].astype(jnp.float32))
    berhu = jnp.where(diff <= delta, diff, (diff * diff + delta_sq) * inv_den)
    err_ref[...] = berhu.astype(err_ref.dtype)
    r = berhu.shape[0] // _SUBLANES
    perr_ref[0] = jnp.sum(berhu.reshape(r, _SUBLANES, _LANES), axis=0)


def _berhu_kernel_masked(scal_ref, p_ref, t_ref, m_ref, err_ref, perr_ref, pmask_ref):
    delta, delta_sq, inv_den = scal_ref[0], scal_ref[1], scal_ref[2]
    diff = jnp.abs(p_ref[...].astype(jnp.float32) - t_ref[...].astype(jnp.float32))
    berhu = jnp.where(diff <= delta, diff, (diff * diff + delta_sq) * inv_den)
    m = m_ref[...].astype(jnp.float32)
    err = m * berhu
    err_ref[...] = err.astype(err_ref.dtype)
    r = err.shape[0] // _SUBLANES
    perr_ref[0] = jnp.sum(err.reshape(r, _SUBLANES, _LANES), axis=0)
    pmask_ref[0] = jnp.sum(m.reshape(r, _SUBLANES, _LANES), axis=0)


# ---------------------------------------------------------------------------
# Wrapper  (RegressionLoss(loss_name='berhu', invert=False).forward)
# ---------------------------------------------------------------------------
def regression_loss(pred, target, mask=None, *, delta_pct=0.2, force_tiled=False):
    """berHu regression loss with dynamic threshold (RegressionLoss.forward)."""
    assert pred.shape == target.shape
    orig_shape = pred.shape
    n = int(math.prod(orig_shape)) if orig_shape else 1
    out_dtype = pred.dtype
    eps = float(jnp.finfo(pred.dtype).eps)   # matches reference: eps of input dtype
    vmem_cap = _vmem_capacity_bytes()

    # ------------------- fused single-call fast path ----------------------
    if n % _LANES == 0:
        vshape = (n // _LANES, _LANES)        # lane-dense; reshape is a free bitcast
    elif len(orig_shape) >= 2:
        vshape = orig_shape                   # no pad, no copy
    else:
        vshape = (1, n)

    padded = _padded_vmem_elems(vshape)
    itemsize = lambda a: jnp.dtype(a.dtype).itemsize
    resident = padded * (itemsize(pred) + itemsize(target) + jnp.dtype(out_dtype).itemsize)
    if mask is not None:
        resident += padded * itemsize(mask)
    resident += 4 * padded * 4                # f32 temporaries (diff / berhu / upcasts)

    fused_budget = min(vmem_cap // 2, 40 << 20)   # v7x: 32 MiB, v5e/v6e: 40 MiB

    if (not force_tiled) and resident <= fused_budget:
        fused_limit = min(fused_budget + (16 << 20), vmem_cap - (8 << 20))
        cparams = pltpu.CompilerParams(vmem_limit_bytes=fused_limit)
        vmem_spec = pl.BlockSpec(memory_space=pltpu.MemorySpace.VMEM)
        p_v = pred.reshape(vshape)
        t_v = target.reshape(vshape)

        if mask is None:
            err_v, serr = pl.pallas_call(
                functools.partial(_fused_kernel, delta_pct=float(delta_pct), eps=eps),
                out_shape=(
                    jax.ShapeDtypeStruct(vshape, out_dtype),
                    jax.ShapeDtypeStruct((1, _LANES), jnp.float32),
                ),
                in_specs=[vmem_spec, vmem_spec],
                out_specs=(vmem_spec, vmem_spec),
                compiler_params=cparams,
            )(p_v, t_v)
            loss = serr[0, 0] / jnp.float32(n)     # mask.sum() == n statically
            mask_out = jnp.ones_like(target)
        else:
            assert mask.shape == pred.shape
            m_v = mask.reshape(vshape)
            err_v, serr, smask = pl.pallas_call(
                functools.partial(_fused_kernel_masked,
                                  delta_pct=float(delta_pct), eps=eps),
                out_shape=(
                    jax.ShapeDtypeStruct(vshape, out_dtype),
                    jax.ShapeDtypeStruct((1, _LANES), jnp.float32),
                    jax.ShapeDtypeStruct((1, _LANES), jnp.float32),
                ),
                in_specs=[vmem_spec, vmem_spec, vmem_spec],
                out_specs=(vmem_spec, vmem_spec, vmem_spec),
                compiler_params=cparams,
            )(p_v, t_v, m_v)
            loss = serr[0, 0] / smask[0, 0]
            mask_out = mask

        err = err_v.reshape(orig_shape)
        return loss, {"err_regr": err, "mask_regr": mask_out}

    # ------------------- tiled two-pass streaming path --------------------
    if vmem_cap >= (128 << 20):               # v5e / v6e: plenty of VMEM headroom
        max_tile_rows, tiled_limit = 8192, 64 << 20
    else:                                     # v7x: 64 MiB physical VMEM
        max_tile_rows, tiled_limit = 4096, 40 << 20

    rows = -(-n // _LANES)                            # ceil(n / 128)
    nb = max(1, -(-rows // max_tile_rows))
    if nb == 1 and rows >= 64:
        nb = 2                                        # feed both v7x TensorCores
    tile_r = _round_up(-(-rows // nb), 32)            # rows/block, multiple of 32
    rows_p = nb * tile_r
    pad = rows_p * _LANES - n

    def _prep(x):
        flat = x.reshape(-1)
        if pad:
            flat = jnp.pad(flat, (0, pad))            # zeros are neutral for max/sums
        return flat.reshape(rows_p, _LANES)

    p2 = _prep(pred)
    t2 = _prep(target)

    grid = (nb,)
    tile_spec = pl.BlockSpec((tile_r, _LANES), lambda i: (i, 0))
    part_spec = pl.BlockSpec((1, _SUBLANES, _LANES), lambda i: (i, 0, 0))
    smem_spec = pl.BlockSpec(memory_space=pltpu.MemorySpace.SMEM)

    def _cparams(fuse):
        return pltpu.CompilerParams(
            dimension_semantics=("parallel",),
            vmem_limit_bytes=tiled_limit,
            allow_input_fusion=fuse,
        )

    # pass 1: global max of |pred - target| via per-block (8,128) partial maxes
    pmax = pl.pallas_call(
        _absmax_kernel,
        out_shape=jax.ShapeDtypeStruct((nb, _SUBLANES, _LANES), jnp.float32),
        grid=grid,
        in_specs=[tile_spec, tile_spec],
        out_specs=part_spec,
        compiler_params=_cparams([True, True] if pad else None),
    )(p2, t2)
    diff_max = jnp.max(pmax)

    # dynamic berHu threshold + hoisted scalar denominator (computed once)
    delta = (delta_pct * diff_max).astype(jnp.float32)
    scal = jnp.stack([delta, delta * delta, 1.0 / (2.0 * delta + eps)]).astype(jnp.float32)

    # pass 2: berHu elementwise + per-block (8,128) partial sums
    if mask is None:
        err2, perr = pl.pallas_call(
            _berhu_kernel,
            out_shape=(
                jax.ShapeDtypeStruct((rows_p, _LANES), out_dtype),
                jax.ShapeDtypeStruct((nb, _SUBLANES, _LANES), jnp.float32),
            ),
            grid=grid,
            in_specs=[smem_spec, tile_spec, tile_spec],
            out_specs=(tile_spec, part_spec),
            compiler_params=_cparams([False, True, True] if pad else None),
        )(scal, p2, t2)
        mask_sum = jnp.float32(n)
        mask_out = jnp.ones_like(target)
    else:
        assert mask.shape == pred.shape
        m2 = _prep(mask)
        err2, perr, pmask = pl.pallas_call(
            _berhu_kernel_masked,
            out_shape=(
                jax.ShapeDtypeStruct((rows_p, _LANES), out_dtype),
                jax.ShapeDtypeStruct((nb, _SUBLANES, _LANES), jnp.float32),
                jax.ShapeDtypeStruct((nb, _SUBLANES, _LANES), jnp.float32),
            ),
            grid=grid,
            in_specs=[smem_spec, tile_spec, tile_spec, tile_spec],
            out_specs=(tile_spec, part_spec, part_spec),
            compiler_params=_cparams([False, True, True, True] if pad else None),
        )(scal, p2, t2, m2)
        mask_sum = jnp.sum(pmask)
        mask_out = mask

    loss = jnp.sum(perr) / mask_sum
    if pad:
        # TODO(synk): ragged tail on the streaming path still costs one extra
        # read+write pass of err for this slice-back.
        err = err2.reshape(-1)[:n].reshape(orig_shape)
    else:
        err = err2.reshape(orig_shape)
    return loss, {"err_regr": err, "mask_regr": mask_out}


# ---------------------------------------------------------------------------
# Pure-JAX reference (mirrors the PyTorch code) for correctness checks.
# ---------------------------------------------------------------------------
def _reference(pred, target, mask=None, delta_pct=0.2):
    if mask is None:
        mask = jnp.ones_like(target)
    diff = jnp.abs(pred - target)
    delta = delta_pct * jnp.max(diff)
    eps = jnp.finfo(pred.dtype).eps
    diff_delta = (diff ** 2 + delta ** 2) / (2 * delta + eps)
    berhu = jnp.where(diff <= delta, diff, diff_delta)
    err = mask * berhu
    loss = err.sum() / mask.sum()
    return loss, err, mask


if __name__ == "__main__":
    key = jax.random.PRNGKey(0)
    k1, k2, k3 = jax.random.split(key, 3)

    # Case 1: NCHW dense-prediction map, mask=None -> fused fast path.
    B, C, H, W = 2, 4, 16, 16
    pred = jax.random.uniform(k1, (B, C, H, W), jnp.float32, 0.1, 10.0)
    target = jax.random.uniform(k2, (B, C, H, W), jnp.float32, 0.1, 10.0)
    loss, aux = regression_loss(pred, target)
    jax.block_until_ready(loss)
    ref_loss, ref_err, _ = _reference(pred, target)
    assert jnp.allclose(loss, ref_loss, rtol=1e-5, atol=1e-5), (loss, ref_loss)
    assert jnp.allclose(aux["err_regr"], ref_err, rtol=1e-5, atol=1e-5)

    # Case 2: explicit mask + ragged shape -> fused path on the original shape
    # (no pad, no copies).
    shape2 = (2, 1, 15, 17)
    pred2 = jax.random.uniform(k1, shape2, jnp.float32, 0.1, 10.0)
    target2 = jax.random.uniform(k2, shape2, jnp.float32, 0.1, 10.0)
    mask2 = (jax.random.uniform(k3, shape2) > 0.3).astype(jnp.float32)
    loss2, aux2 = regression_loss(pred2, target2, mask2)
    jax.block_until_ready(loss2)
    ref_loss2, ref_err2, _ = _reference(pred2, target2, mask2)
    assert jnp.allclose(loss2, ref_loss2, rtol=1e-5, atol=1e-5), (loss2, ref_loss2)
    assert jnp.allclose(aux2["err_regr"], ref_err2, rtol=1e-5, atol=1e-5)

    # Case 3: force the streaming tiled path (aligned shape, masked, nb >= 2).
    shape3 = (2, 4, 64, 128)
    pred3 = jax.random.uniform(k1, shape3, jnp.float32, 0.1, 10.0)
    target3 = jax.random.uniform(k2, shape3, jnp.float32, 0.1, 10.0)
    mask3 = (jax.random.uniform(k3, shape3) > 0.3).astype(jnp.float32)
    loss3, aux3 = regression_loss(pred3, target3, mask3, force_tiled=True)
    jax.block_until_ready(loss3)
    ref_loss3, ref_err3, _ = _reference(pred3, target3, mask3)
    assert jnp.allclose(loss3, ref_loss3, rtol=1e-5, atol=1e-5), (loss3, ref_loss3)
    assert jnp.allclose(aux3["err_regr"], ref_err3, rtol=1e-5, atol=1e-5)

    # Case 4: force the tiled path with a ragged (padded) shape, mask=None.
    shape4 = (2, 3, 50, 60)
    pred4 = jax.random.uniform(k1, shape4, jnp.float32, 0.1, 10.0)
    target4 = jax.random.uniform(k2, shape4, jnp.float32, 0.1, 10.0)
    loss4, aux4 = regression_loss(pred4, target4, force_tiled=True)
    jax.block_until_ready(loss4)
    ref_loss4, ref_err4, _ = _reference(pred4, target4)
    assert jnp.allclose(loss4, ref_loss4, rtol=1e-5, atol=1e-5), (loss4, ref_loss4)
    assert jnp.allclose(aux4["err_regr"], ref_err4, rtol=1e-5, atol=1e-5)

    print("KERNEL_OK")
</pallas_src>

<mosaic_0001>
module attributes {stable_mosaic.version = 11 : i64} {
  func.func @_fused_kernel(%arg0: memref<16x128xf32, #tpu.memory_space<vmem>>, %arg1: memref<16x128xf32, #tpu.memory_space<vmem>>, %arg2: memref<16x128xf32, #tpu.memory_space<vmem>>, %arg3: memref<1x128xf32, #tpu.memory_space<vmem>>) attributes {dimension_semantics = [], scalar_prefetch = 0 : i64, scratch_operands = 0 : i64, tpu.core_type = #tpu.core_type<tc>} {
    %c0 = arith.constant 0 : index
    %c0_0 = arith.constant 0 : index
    %0 = vector.load %arg0[%c0, %c0_0] : memref<16x128xf32, #tpu.memory_space<vmem>>, vector<16x128xf32>
    %c0_1 = arith.constant 0 : index
    %c0_2 = arith.constant 0 : index
    %1 = vector.load %arg1[%c0_1, %c0_2] : memref<16x128xf32, #tpu.memory_space<vmem>>, vector<16x128xf32>
    %2 = arith.subf %0, %1 : vector<16x128xf32>
    %3 = math.absf %2 : vector<16x128xf32>
    %4 = vector.shape_cast %3 : vector<16x128xf32> to vector<1x16x128xf32>
    %cst = arith.constant dense<0xFF800000> : vector<1xf32>
    %5 = vector.multi_reduction <maximumf>, %4, %cst [1, 2] : vector<1x16x128xf32> to vector<1xf32>
    %6 = vector.shape_cast %5 : vector<1xf32> to vector<1x1x1xf32>
    %7 = vector.extract %6[0, 0, 0] : f32 from vector<1x1x1xf32>
    %cst_3 = arith.constant 2.000000e-01 : f32
    %8 = arith.mulf %cst_3, %7 : f32
    %cst_4 = arith.constant 2.000000e+00 : f32
    %9 = arith.mulf %cst_4, %8 : f32
    %cst_5 = arith.constant 1.1920929E-7 : f32
    %10 = arith.addf %9, %cst_5 : f32
    %cst_6 = arith.constant 1.000000e+00 : f32
    %11 = arith.divf %cst_6, %10 : f32
    %12 = vector.broadcast %8 : f32 to vector<16x128xf32>
    %13 = arith.cmpf ole, %3, %12 : vector<16x128xf32>
    %14 = arith.mulf %3, %3 : vector<16x128xf32>
    %15 = arith.mulf %8, %8 : f32
    %16 = vector.broadcast %15 : f32 to vector<16x128xf32>
    %17 = arith.addf %14, %16 : vector<16x128xf32>
    %18 = vector.broadcast %11 : f32 to vector<16x128xf32>
    %19 = arith.mulf %17, %18 : vector<16x128xf32>
    %20 = arith.select %13, %3, %19 : vector<16x128xi1>, vector<16x128xf32>
    %c0_7 = arith.constant 0 : index
    %c0_8 = arith.constant 0 : index
    %21 = vector.load %arg2[%c0_7, %c0_8] : memref<16x128xf32, #tpu.memory_space<vmem>>, vector<16x128xf32>
    tpu.vector_store %arg2[%c0_7, %c0_8], %20 {strides = array<i32>} : memref<16x128xf32, #tpu.memory_space<vmem>>, vector<16x128xf32>,
    %22 = vector.shape_cast %20 : vector<16x128xf32> to vector<1x16x128xf32>
    %cst_9 = arith.constant dense<0.000000e+00> : vector<1xf32>
    %23 = vector.multi_reduction <add>, %22, %cst_9 [1, 2] : vector<1x16x128xf32> to vector<1xf32>
    %24 = vector.shape_cast %23 : vector<1xf32> to vector<1x1x1xf32>
    %25 = vector.extract %24[0, 0, 0] : f32 from vector<1x1x1xf32>
    %26 = vector.broadcast %25 : f32 to vector<1x128xf32>
    %c0_10 = arith.constant 0 : index
    %c0_11 = arith.constant 0 : index
    %27 = vector.load %arg3[%c0_10, %c0_11] : memref<1x128xf32, #tpu.memory_space<vmem>>, vector<1x128xf32>
    tpu.vector_store %arg3[%c0_10, %c0_11], %26 {strides = array<i32>} : memref<1x128xf32, #tpu.memory_space<vmem>>, vector<1x128xf32>,
    return
  }
}

</mosaic_0001>

<bundles_post_ra>
// kernel: tpu_custom_call.1
= control target key start
LH: loop header
LB: loop body
LE: loop exit
PB: predicated region body
PF: predicated region fallthrough
CT: control target
= control target key end

     0   :  { %9 = vsyncpa [#allocation3], 0  ;;  %s320_s0 = inlined_call_operand.hbm [shape: f32[16,128], index: 0, kind: input, shape index: {}]   ;;  %s321_s1 = inlined_call_operand.hbm [shape: f32[16,128], index: 1, kind: input, shape index: {}]   ;;  %s322_s2 = inlined_call_operand.hbm [shape: f32[16,128], index: 2, kind: output, shape index: {0}]   ;;  %s323_s3 = inlined_call_operand.hbm [shape: f32[1,128], index: 3, kind: output, shape index: {1}]  }
   0x1   :  { %10 = vsyncpa [#allocation6], 0 }
   0x2   :  { %11 = vsyncpa [#allocation4], 0 }
   0x3   :  { %12 = vsyncpa [#allocation9], 0  ;;  %s237_s12 = smov [#allocation2]   ;;  %s141_s16 = scalar_lea.hbm %s320_s0, 256 }
   0x4   :  { %s18_s13 = sshll.u32 %s237_s12, 4  ;;  %p142_p0 = scmp.ne.s32.totalorder %s320_s0, %s141_s16  ;;  %s19_s13 = int_to_ptr.vmem [resolvable:$true] %s18_s13 }
   0x5   :  { %p145_p1 = scmp.lt.u32.totalorder %s141_s16, %s320_s0 }
   0x7   :  { %p147_p2 = pnand %p145_p1, %p142_p0 }
   0x9   :  { %150 = shalt.err (!%p147_p2)
}
   0xa   :  { %s151_s21 = scalar_lea.vmem %s19_s13, 256  ;;  %p156_p4 = scmp.lt.s32.totalorder %s19_s13, %s19_s13 }
   0xb   :  { %p152_p3 = scmp.ne.s32.totalorder %s19_s13, %s151_s21  ;;  %p157_p5 = scmp.lt.s32.totalorder %s151_s21, %s151_s21 }
   0xd   :  { %p158_p6 = por %p157_p5, %p156_p4 }
   0xf   :  { %p159_p7 = pnand %p158_p6, %p152_p3 }
  0x11   :  { %162 = shalt.err (!%p159_p7)
}
  0x12   :  { %s238_s22 = smov 128   ;;  %s239_s23 = smov 8  }
  0x13   :  { %24 = dma.hbm_to_vmem [thread:$0]  %s320_s0, 256, %s19_s13, [#allocation3], %s238_s22, %s238_s22, %s239_s23  }
  0x14   :  { %s240_s26 = smov [#allocation5]   ;;  %s163_s30 = scalar_lea.hbm %s321_s1, 256 }
  0x15   :  { %s30_s27 = sshll.u32 %s240_s26, 4  ;;  %p164_p8 = scmp.ne.s32.totalorder %s321_s1, %s163_s30  ;;  %s31_s27 = int_to_ptr.vmem [resolvable:$true] %s30_s27 }
  0x16   :  { %p167_p9 = scmp.lt.u32.totalorder %s163_s30, %s321_s1 }
  0x18   :  { %p169_p10 = pnand %p167_p9, %p164_p8 }
  0x1a   :  { %172 = shalt.err (!%p169_p10)
}
  0x1b   :  { %s173_s8 = scalar_lea.vmem %s31_s27, 256  ;;  %p178_p12 = scmp.lt.s32.totalorder %s31_s27, %s31_s27 }
  0x1c   :  { %p174_p11 = scmp.ne.s32.totalorder %s31_s27, %s173_s8  ;;  %p179_p13 = scmp.lt.s32.totalorder %s173_s8, %s173_s8 }
  0x1e   :  { %p180_p0 = por %p179_p13, %p178_p12 }
  0x20   :  { %p181_p1 = pnand %p180_p0, %p174_p11 }
  0x22   :  { %184 = shalt.err (!%p181_p1)
}
  0x23   :  { %36 = dma.hbm_to_vmem [thread:$0]  %s321_s1, 256, %s31_s27, [#allocation6], %s238_s22, %s238_s22, %s239_s23  }
  0x24   :  { %229 = dma.done.wait [#allocation3], 256  }
  0x25   :  { %230 = vsyncadd [#allocation3], 4294967040 }
  0x26   :  { %231 = dma.done.wait [#allocation6], 256  }
  0x27   :  { %232 = vsyncadd [#allocation6], 4294967040  ;;  %v43_v0 = vld [vmem:[#allocation2] sm:$0xff]  ;;  %v44_v1 = vld [vmem:[#allocation2 + $0x8] sm:$0xff]  ;;  %s241_s15 = smov [#allocation7]  }
  0x28   :  { %v45_v2 = vld [vmem:[#allocation5] sm:$0xff]  ;;  %v46_v3 = vld [vmem:[#allocation5 + $0x8] sm:$0xff]  ;;  %s100_s16 = sshll.u32 %s241_s15, 4  ;;  %s101_s16 = int_to_ptr.vmem [resolvable:$true] %s100_s16 }
  0x29   :  { %v47_v4 = vsub.f32 %v43_v0, %v45_v2  ;;  %v48_v5 = vsub.f32 %v44_v1, %v46_v3  ;;  %s185_s17 = scalar_lea.vmem %s101_s16, 256  ;;  %p190_p3 = scmp.lt.s32.totalorder %s101_s16, %s101_s16 }
  0x2a   :  { %p186_p2 = scmp.ne.s32.totalorder %s101_s16, %s185_s17  ;;  %p191_p4 = scmp.lt.s32.totalorder %s185_s17, %s185_s17 }
  0x2b   :  { %v49_v6 = vand.u32 2147483647, %v47_v4  ;;  %v50_v7 = vand.u32 2147483647, %v48_v5 }
  0x2c   :  { %p192_p5 = por %p191_p4, %p190_p3 }
  0x2d   :  { %v51_v8 = vmax.f32 %v49_v6, %v50_v7  ;;  %v70_v18 = vmul.f32 %v49_v6, %v49_v6  ;;  %v71_v19 = vmul.f32 %v50_v7, %v50_v7 }
  0x2e   :  { %p193_p6 = pnand %p192_p5, %p186_p2 }
  0x2f   :  { %52 = vmax.xlane.f32.xlu0 %v51_v8 }
  0xbc   :  { %v53_v9 = vpop.xlane.xlu0 %52 }
  0xbd   :  { %v54_v10 = vrot.slane %v53_v9, 4 }
  0xbf   :  { %v55_v11 = vmax.f32 %v53_v9, %v54_v10 }
  0xc1   :  { %v56_v12 = vrot.slane %v55_v11, 2 }
  0xc3   :  { %v57_v13 = vmax.f32 %v55_v11, %v56_v12 }
  0xc5   :  { %v58_v14 = vrot.slane %v57_v13, 1 }
  0xc7   :  { %v59_v15 = vmax.f32 %v57_v13, %v58_v14 }
  0xc9   :  { %127 = vpush %v59_v15 }
  0xfa   :  { %s128_s1 = spop %127 }
  0xfb   :  { %s61_s10 = smul.f32 0.2, %s128_s1 }
  0xfd   :  { %s62_s11 = smul.f32 2.0, %s61_s10  ;;  %v67_v21 = vstv %s61_s10 }
  0xfe   :  { %s72_s13 = smul.f32 %s61_s10, %s61_s10  ;;  %vm68_vm0 = vcmp.le.f32.partialorder %v49_v6, %v67_v21  ;;  %vm69_vm1 = vcmp.le.f32.partialorder %v50_v7, %v67_v21 }
  0xff   :  { %s63_s12 = sadd.f32 1.1920929e-07, %s62_s11 }
 0x100   :  { %v73_v20 = vstv %s72_s13 }
 0x101   :  { %v64_v16 = vstv %s63_s12  ;;  %v74_v22 = vadd.f32 %v73_v20, %v70_v18  ;;  %v75_v23 = vadd.f32 %v73_v20, %v71_v19 }
 0x102   :  { %139 = vrcp.f32 %v64_v16 }
 0x10c   :  { %v140_v17 = vpop.eup %139 }
 0x10d   :  { %129 = vpush %v140_v17 }
 0x13e   :  { %s130_s14 = spop %129 }
 0x13f   :  { %v76_v24 = vstv %s130_s14 }
 0x140   :  { %v77_v25 = vmul.f32 %v76_v24, %v74_v22  ;;  %v78_v26 = vmul.f32 %v76_v24, %v75_v23 }
 0x142   :  { %v79_v27 = vsel %vm68_vm0, %v49_v6, %v77_v25  ;;  %v80_v28 = vsel %vm69_vm1, %v50_v7, %v78_v26 }
 0x143   :  { %v83_v29 = vadd.f32 %v80_v28, %v79_v27  ;;  %81 = vst [vmem:[#allocation7] sm:$0xff] %v79_v27  ;;  %82 = vst [vmem:[#allocation7 + $0x8] sm:$0xff] %v80_v28 }
 0x145   :  { %84 = vadd.xlane.f32.xlu0 %v83_v29 }
 0x146   :  { %196 = shalt.err (!%p193_p6)
}
 0x147   :  { %s197_s20 = scalar_lea.hbm %s322_s2, 256 }
 0x148   :  { %p198_p7 = scmp.ne.s32.totalorder %s322_s2, %s197_s20  ;;  %p201_p8 = scmp.lt.u32.totalorder %s197_s20, %s322_s2 }
 0x14a   :  { %p203_p9 = pnand %p201_p8, %p198_p7 }
 0x14c   :  { %206 = shalt.err (!%p203_p9)
}
 0x14d   :  { %106 = dma.vmem_to_hbm [thread:$0]  %s101_s16, 256, %s322_s2, [#allocation4], %s238_s22, %s238_s22, %s239_s23  }
 0x14e   :  { %s242_s29 = smov [#allocation8]  }
 0x14f   :  { %s113_s30 = sshll.u32 %s242_s29, 4  ;;  %s114_s30 = int_to_ptr.vmem [resolvable:$true] %s113_s30 }
 0x150   :  { %s207_s5 = scalar_lea.vmem %s114_s30, 16  ;;  %s211_s6 = scalar_lea.vmem %s114_s30, 32 }
 0x151   :  { %p208_p10 = scmp.ne.s32.totalorder %s114_s30, %s207_s5  ;;  %p212_p11 = scmp.lt.s32.totalorder %s114_s30, %s114_s30 }
 0x152   :  { %p213_p12 = scmp.lt.s32.totalorder %s211_s6, %s207_s5 }
 0x154   :  { %p214_p13 = por %p213_p12, %p212_p11 }
 0x156   :  { %p215_p0 = pnand %p214_p13, %p208_p10 }
 0x1d2   :  { %v85_v30 = vpop.xlane.xlu0 %84 }
 0x1d3   :  { %v86_v31 = vrot.slane %v85_v30, 4 }
 0x1d5   :  { %v87_v32 = vadd.f32 %v86_v31, %v85_v30 }
 0x1d7   :  { %v88_v33 = vrot.slane %v87_v32, 2 }
 0x1d9   :  { %v89_v34 = vadd.f32 %v88_v33, %v87_v32 }
 0x1db   :  { %v90_v35 = vrot.slane %v89_v34, 1 }
 0x1dd   :  { %v91_v36 = vadd.f32 %v90_v35, %v89_v34 }
 0x1df   :  { %131 = vpush %v91_v36 }
 0x210   :  { %s132_s4 = spop %131 }
 0x211   :  { %v93_v37 = vstv %s132_s4 }
 0x212   :  { %94 = vst [vmem:[#allocation8] sm:$0x1] %v93_v37 }
 0x213   :  { %218 = shalt.err (!%p215_p0)
}
 0x214   :  { %s219_s23 = scalar_lea.hbm %s323_s3, 16 }
 0x215   :  { %p220_p1 = scmp.ne.s32.totalorder %s323_s3, %s219_s23  ;;  %p223_p2 = scmp.lt.u32.totalorder %s219_s23, %s323_s3 }
 0x217   :  { %p225_p3 = pnand %p223_p2, %p220_p1 }
 0x219   :  { %228 = shalt.err (!%p225_p3)
}
 0x21a   :  { %116 = dma.vmem_to_hbm [thread:$0]  %s114_s30, 16, %s323_s3, [#allocation9]  }
 0x21b   :  { %233 = dma.done.wait [#allocation4], 256  }
 0x21c   :  { %234 = vsyncadd [#allocation4], 4294967040 }
 0x21d   :  { %235 = dma.done.wait [#allocation9], 16  }
 0x21e   :  { %236 = vsyncadd [#allocation9], 4294967280 }
 0x21f   :  { %123 = vsyncpa [#allocation3], 1 }
 0x220   :  { %124 = vsyncpa [#allocation6], 1 }
 0x221   :  { %125 = vsyncpa [#allocation4], 1 }
 0x222   :  { %126 = vsyncpa [#allocation9], 1 }

</bundles_post_ra>
